<compile_context>
chip_gen: v6e
topology: v6e:2x2x1
jax: 0.10.0
libtpu: 0.0.40
codegen_flags: <defaults>
</compile_context>

<pallas_src>
import functools

import jax
import jax.numpy as jnp
from jax.experimental import pallas as pl
from jax.experimental.pallas import tpu as pltpu

LANES = 128
SUBLANES = 8
TILE_R_MAX = 2048   # 2048 rows * 128 lanes * 4 B = 1 MiB per input block
NUM_CORES = 2       # leading "parallel" grid axis (uses both TCs on v7x)


def _dice_partial_kernel(steps_full, steps_per_core,
                         p_ref, t_ref, o_prod_ref, o_sum_ref):
    c = pl.program_id(0)   # core-split axis ("parallel")
    i = pl.program_id(1)   # streaming / reduction axis ("arbitrary")

    @pl.when(i == 0)
    def _init():
        o_prod_ref[...] = jnp.zeros_like(o_prod_ref)
        o_sum_ref[...] = jnp.zeros_like(o_sum_ref)

    step = c * steps_per_core + i

    @pl.when(step < steps_full)   # clamped duplicate blocks contribute nothing
    def _accumulate():
        p = p_ref[...].astype(jnp.float32)
        t = t_ref[...].astype(jnp.float32)
        # Pure VPU adds across vreg groups into resident (8, 128) accumulators;
        # no cross-lane reduction and no scalar SMEM dependency per step.
        o_prod_ref[...] += jnp.sum((p * t).reshape(-1, SUBLANES, LANES), axis=0)
        o_sum_ref[...] += jnp.sum((p + t).reshape(-1, SUBLANES, LANES), axis=0)


@jax.jit
def dice_loss(preds, targets, smooth=1.0):
    """Matches DiceLoss.forward: scalar float32 loss."""
    assert preds.shape == targets.shape
    p = preds.reshape(-1)
    t = targets.reshape(-1)
    n = p.shape[0]

    # Tiny tail pad only (<= SUBLANES*LANES - 1 elements, usually 0) so the flat
    # array reshapes to a lane-dense (rows, 128) slab with rows % 8 == 0.
    pad = (-n) % (SUBLANES * LANES)
    if pad:
        p = jnp.pad(p, (0, pad))
        t = jnp.pad(t, (0, pad))
    rows = (n + pad) // LANES

    p2 = p.reshape(rows, LANES)
    t2 = t.reshape(rows, LANES)

    # Fixed large tile (capped so small inputs still split across both cores).
    tile_r = max(SUBLANES,
                 min(TILE_R_MAX, (rows // NUM_CORES) // SUBLANES * SUBLANES))
    steps_full = rows // tile_r                 # >= 1 full, in-bounds blocks
    tail_rows = rows - steps_full * tile_r      # < tile_r, multiple of 8

    steps_per_core = pl.cdiv(steps_full, NUM_CORES)
    grid = (NUM_CORES, steps_per_core)

    # Clamp keeps every DMA'd block fully in bounds; the kernel's pl.when
    # discards the (masked) duplicate work for the clamped steps.
    in_map = lambda c, i: (jnp.minimum(c * steps_per_core + i, steps_full - 1), 0)
    out_map = lambda c, i: (c, 0)

    kernel = functools.partial(_dice_partial_kernel, steps_full, steps_per_core)

    prod_part, sum_part = pl.pallas_call(
        kernel,
        out_shape=(
            jax.ShapeDtypeStruct((NUM_CORES * SUBLANES, LANES), jnp.float32),
            jax.ShapeDtypeStruct((NUM_CORES * SUBLANES, LANES), jnp.float32),
        ),
        grid_spec=pltpu.PrefetchScalarGridSpec(
            num_scalar_prefetch=0,
            grid=grid,
            in_specs=[
                pl.BlockSpec((tile_r, LANES), in_map),
                pl.BlockSpec((tile_r, LANES), in_map),
            ],
            out_specs=[
                pl.BlockSpec((SUBLANES, LANES), out_map),
                pl.BlockSpec((SUBLANES, LANES), out_map),
            ],
        ),
        compiler_params=pltpu.CompilerParams(
            dimension_semantics=("parallel", "arbitrary"),
        ),
    )(p2, t2)

    inter = jnp.sum(prod_part)
    s_pt = jnp.sum(sum_part)

    if tail_rows:  # ragged tail (< one tile per input): trivial XLA reduction
        pt = p2[steps_full * tile_r:, :].astype(jnp.float32)
        tt = t2[steps_full * tile_r:, :].astype(jnp.float32)
        inter = inter + jnp.sum(pt * tt)
        s_pt = s_pt + jnp.sum(pt) + jnp.sum(tt)

    dice = (2.0 * inter + smooth) / (s_pt + smooth)
    # torch.mean(1 - dice) over a scalar == the scalar itself
    return (1.0 - dice).astype(jnp.float32)


def _dice_loss_ref(preds, targets, smooth=1.0):
    preds = preds.astype(jnp.float32)
    targets = targets.astype(jnp.float32)
    intersection = jnp.sum(preds * targets)
    dice = (2.0 * intersection + smooth) / (jnp.sum(preds) + jnp.sum(targets) + smooth)
    return jnp.mean(1.0 - dice)


if __name__ == "__main__":
    key = jax.random.PRNGKey(0)
    k1, k2 = jax.random.split(key)
    # Typical segmentation shapes (NCHW): batch=2, channels=4, 16x16 spatial.
    preds = jax.nn.sigmoid(jax.random.normal(k1, (2, 4, 16, 16), dtype=jnp.float32))
    targets = (jax.random.uniform(k2, (2, 4, 16, 16)) > 0.5).astype(jnp.float32)

    loss = jax.block_until_ready(dice_loss(preds, targets, smooth=1.0))
    ref = jax.block_until_ready(_dice_loss_ref(preds, targets, smooth=1.0))

    assert jnp.allclose(loss, ref, rtol=1e-5, atol=1e-5), (loss, ref)
    print("KERNEL_OK")
</pallas_src>

<mosaic_0001>
module attributes {stable_mosaic.version = 11 : i64} {
  func.func @_dice_partial_kernel(%arg0: i32, %arg1: i32, %arg2: memref<8x128xf32, #tpu.memory_space<vmem>>, %arg3: memref<8x128xf32, #tpu.memory_space<vmem>>, %arg4: memref<8x128xf32, #tpu.memory_space<vmem>>, %arg5: memref<8x128xf32, #tpu.memory_space<vmem>>) attributes {dimension_semantics = [#tpu.dimension_semantics<parallel>, #tpu.dimension_semantics<arbitrary>], iteration_bounds = array<i64: 2, 1>, scalar_prefetch = 0 : i64, scratch_operands = 0 : i64, tpu.core_type = #tpu.core_type<tc>, window_params = [{transform_indices = @transform_0, window_bounds = array<i64: 8, 128>}, {transform_indices = @transform_1, window_bounds = array<i64: 8, 128>}, {transform_indices = @transform_2, window_bounds = array<i64: 8, 128>}, {transform_indices = @transform_3, window_bounds = array<i64: 8, 128>}]} {
    %c0_i32 = arith.constant 0 : i32
    %0 = arith.cmpi eq, %arg1, %c0_i32 : i32
    %1 = arith.extui %0 : i1 to i32
    %c0_i32_0 = arith.constant 0 : i32
    %2 = arith.cmpi ne, %1, %c0_i32_0 : i32
    scf.if %2 {
      %cst = arith.constant 0.000000e+00 : f32
      %8 = vector.broadcast %cst : f32 to vector<8x128xf32>
      %c0 = arith.constant 0 : index
      %c0_2 = arith.constant 0 : index
      %9 = vector.load %arg4[%c0, %c0_2] : memref<8x128xf32, #tpu.memory_space<vmem>>, vector<8x128xf32>
      tpu.vector_store %arg4[%c0, %c0_2], %8 {strides = array<i32>} : memref<8x128xf32, #tpu.memory_space<vmem>>, vector<8x128xf32>,
      %cst_3 = arith.constant 0.000000e+00 : f32
      %10 = vector.broadcast %cst_3 : f32 to vector<8x128xf32>
      %c0_4 = arith.constant 0 : index
      %c0_5 = arith.constant 0 : index
      %11 = vector.load %arg5[%c0_4, %c0_5] : memref<8x128xf32, #tpu.memory_space<vmem>>, vector<8x128xf32>
      tpu.vector_store %arg5[%c0_4, %c0_5], %10 {strides = array<i32>} : memref<8x128xf32, #tpu.memory_space<vmem>>, vector<8x128xf32>,
    } else {
    }
    %c1_i32 = arith.constant 1 : i32
    %3 = arith.muli %arg0, %c1_i32 : i32
    %4 = arith.addi %3, %arg1 : i32
    %c2_i32 = arith.constant 2 : i32
    %5 = arith.cmpi slt, %4, %c2_i32 : i32
    %6 = arith.extui %5 : i1 to i32
    %c0_i32_1 = arith.constant 0 : i32
    %7 = arith.cmpi ne, %6, %c0_i32_1 : i32
    scf.if %7 {
      %c0 = arith.constant 0 : index
      %c0_2 = arith.constant 0 : index
      %8 = vector.load %arg2[%c0, %c0_2] : memref<8x128xf32, #tpu.memory_space<vmem>>, vector<8x128xf32>
      %c0_3 = arith.constant 0 : index
      %c0_4 = arith.constant 0 : index
      %9 = vector.load %arg3[%c0_3, %c0_4] : memref<8x128xf32, #tpu.memory_space<vmem>>, vector<8x128xf32>
      %c0_5 = arith.constant 0 : index
      %c0_6 = arith.constant 0 : index
      %10 = vector.load %arg4[%c0_5, %c0_6] : memref<8x128xf32, #tpu.memory_space<vmem>>, vector<8x128xf32>
      %11 = arith.mulf %8, %9 : vector<8x128xf32>
      %12 = vector.shape_cast %11 : vector<8x128xf32> to vector<1x8x128xf32>
      %cst = arith.constant dense<0.000000e+00> : vector<8x128xf32>
      %13 = vector.multi_reduction <add>, %12, %cst [0] : vector<1x8x128xf32> to vector<8x128xf32>
      %14 = arith.addf %10, %13 : vector<8x128xf32>
      %c0_7 = arith.constant 0 : index
      %c0_8 = arith.constant 0 : index
      %15 = vector.load %arg4[%c0_7, %c0_8] : memref<8x128xf32, #tpu.memory_space<vmem>>, vector<8x128xf32>
      tpu.vector_store %arg4[%c0_7, %c0_8], %14 {strides = array<i32>} : memref<8x128xf32, #tpu.memory_space<vmem>>, vector<8x128xf32>,
      %c0_9 = arith.constant 0 : index
      %c0_10 = arith.constant 0 : index
      %16 = vector.load %arg5[%c0_9, %c0_10] : memref<8x128xf32, #tpu.memory_space<vmem>>, vector<8x128xf32>
      %17 = arith.addf %8, %9 : vector<8x128xf32>
      %18 = vector.shape_cast %17 : vector<8x128xf32> to vector<1x8x128xf32>
      %cst_11 = arith.constant dense<0.000000e+00> : vector<8x128xf32>
      %19 = vector.multi_reduction <add>, %18, %cst_11 [0] : vector<1x8x128xf32> to vector<8x128xf32>
      %20 = arith.addf %16, %19 : vector<8x128xf32>
      %c0_12 = arith.constant 0 : index
      %c0_13 = arith.constant 0 : index
      %21 = vector.load %arg5[%c0_12, %c0_13] : memref<8x128xf32, #tpu.memory_space<vmem>>, vector<8x128xf32>
      tpu.vector_store %arg5[%c0_12, %c0_13], %20 {strides = array<i32>} : memref<8x128xf32, #tpu.memory_space<vmem>>, vector<8x128xf32>,
    } else {
    }
    return
  }
  func.func @transform_0(%arg0: i32, %arg1: i32) -> (i32, i32) {
    %c1_i32 = arith.constant 1 : i32
    %0 = arith.muli %arg0, %c1_i32 : i32
    %1 = arith.addi %0, %arg1 : i32
    %c1_i32_0 = arith.constant 1 : i32
    %2 = arith.minsi %1, %c1_i32_0 : i32
    %c0_i32 = arith.constant 0 : i32
    %c0_i32_1 = arith.constant 0 : i32
    return %2, %c0_i32 : i32, i32
  }
  func.func @transform_1(%arg0: i32, %arg1: i32) -> (i32, i32) {
    %c1_i32 = arith.constant 1 : i32
    %0 = arith.muli %arg0, %c1_i32 : i32
    %1 = arith.addi %0, %arg1 : i32
    %c1_i32_0 = arith.constant 1 : i32
    %2 = arith.minsi %1, %c1_i32_0 : i32
    %c0_i32 = arith.constant 0 : i32
    %c0_i32_1 = arith.constant 0 : i32
    return %2, %c0_i32 : i32, i32
  }
  func.func @transform_2(%arg0: i32, %arg1: i32) -> (i32, i32) {
    %c0_i32 = arith.constant 0 : i32
    %c0_i32_0 = arith.constant 0 : i32
    return %arg0, %c0_i32 : i32, i32
  }
  func.func @transform_3(%arg0: i32, %arg1: i32) -> (i32, i32) {
    %c0_i32 = arith.constant 0 : i32
    %c0_i32_0 = arith.constant 0 : i32
    return %arg0, %c0_i32 : i32, i32
  }
}

</mosaic_0001>

<bundles_post_ra>
// kernel: dice_loss.1
= control target key start
LH: loop header
LB: loop body
LE: loop exit
PB: predicated region body
PF: predicated region fallthrough
CT: control target
= control target key end

     0   :  { %s463_s12 = smov 0   ;;  %s465_s13 = smov 0   ;;  %s502_s0 = inlined_call_operand.vmem [shape: f32[16,128], index: 0, kind: input, shape index: {}]   ;;  %s503_s1 = inlined_call_operand.vmem [shape: f32[16,128], index: 1, kind: input, shape index: {}]   ;;  %s504_s2 = inlined_call_operand.vmem [shape: f32[16,128], index: 2, kind: output, shape index: {0}]   ;;  %s505_s3 = inlined_call_operand.vmem [shape: f32[16,128], index: 3, kind: output, shape index: {1}]  }
   0x1   :  { %s467_s14 = smov 0  }
   0x2 LB: > { %s26_s15 = sadd.s32 1, %s436_s13  ;;  %p379_p0 = scmp.ge.s32.totalorder %s440_s14, 1  ;;  %s440_s14 = sphi %s467_s14, %s14_s14   ;;  %s436_s13 = sphi %s465_s13, %s507_s13   ;;  %s432_s12 = sphi %s463_s12, %s506_s12  }
   0x3   : > { %p28_p1 = scmp.ge.s32.totalorder %s26_s15, 2  ;;  %p184_p2 = scmp.lt.s32.totalorder %s440_s14, 3 }
   0x5   : > { %s509_s15 = smov (%p28_p1, %s26_s15), 0  ;;  %p185_p3 = pnand %p379_p0, %p184_p2 }
   0x6   : > { %p221_p4 = scmp.lt.s32.totalorder (!%p185_p3), %s432_s12, 1  ;;  %p390_p5 = scmp.ge.s32.totalorder (!%p185_p3), %s432_s12, 2 }
   0x7   : > { %188 = sbr.rel (%p185_p3) target bundleno = 30 (0x1e), region = 28 }
   0xc   : > { %s222_s16 = scalar_select %p221_p4, %s432_s12, 1  ;;  %v442_v0 = vmov 0.0  }
   0xe   : > { %s224_s17 = scalar_select %p221_p4, %s222_s16, 1 }
   0xf   : > { %s388_s18 = sshll.u32 %s222_s16, 3  ;;  %258 = sbr.rel (%p390_p5) target bundleno = 30 (0x1e), region = 36 }
  0x10   : > { %s383_s19 = sshll.u32 %s224_s17, 3  ;;  %s243_s22 = scalar_lea.vmem %s504_s2, %s388_s18 }
  0x11   : > { %s226_s25 = scalar_lea.vmem %s502_s0, %s383_s19  ;;  %s236_s28 = scalar_lea.vmem %s503_s1, %s383_s19  ;;  %252 = vst [vmem:[%s243_s22] sm:$0xff] %v442_v0 }
  0x12   : > { %s247_s4 = scalar_lea.vmem %s505_s3, %s388_s18 }
  0x13   : > { %253 = vst [vmem:[%s247_s4] sm:$0xff] %v442_v0 }
  0x14   : > { %v259_v1 = vld [vmem:[%s226_s25] sm:$0xff] }
  0x15   : > { %v260_v2 = vld [vmem:[%s236_s28] sm:$0xff] }
  0x16   : > { %v262_v4 = vmul.f32 %v260_v2, %v259_v1  ;;  %v267_v6 = vadd.f32 %v260_v2, %v259_v1 }
  0x18   : > { %v261_v3 = vld [vmem:[%s243_s22] sm:$0xff] }
  0x19   : > { %v264_v7 = vadd.f32 %v262_v4, %v261_v3 }
  0x1a   : > { %v266_v5 = vld [vmem:[%s247_s4] sm:$0xff] }
  0x1b   : > { %v269_v8 = vadd.f32 %v267_v6, %v266_v5  ;;  %265 = vst [vmem:[%s243_s22] sm:$0xff] %v264_v7 }
  0x1d   : > { %270 = vst [vmem:[%s247_s4] sm:$0xff] %v269_v8 }
  0x1e PF: > { %s14_s14 = sadd.s32 1, %s440_s14   ;;  %s506_s12 = smov %s436_s13 }
  0x1f   : > { %p11_p6 = scmp.ge.s32.totalorder %s14_s14, 4   ;;  %s507_s13 = smov %s509_s15 }
  0x21   :  { %13 = sbr.rel (!%p11_p6) target bundleno = 2 (0x2), region = 81 }

</bundles_post_ra>
